<compile_context>
chip_gen: v6e
topology: v6e:2x2x1
jax: 0.10.0
libtpu: 0.0.40
codegen_flags: <defaults>
</compile_context>

<pallas_src>
import numpy as np
import jax
import jax.numpy as jnp
from jax import lax
from jax.experimental import pallas as pl
from jax.experimental.pallas import tpu as pltpu

# Deterministic parameters from the module's __init__:
# k = [0.05, 0.25, 0.4, 0.25, 0.05]; kernel = k^T k (separable), per channel.
_K1D = (0.05, 0.25, 0.4, 0.25, 0.05)
_EPS = 1e-3  # CharbonnierLoss eps


def _tpu_vmem_capacity_bytes():
    try:
        return int(pltpu.get_tpu_info().vmem_capacity_bytes)
    except Exception:
        return 128 * 1024 * 1024


_VMEM_CAP = _tpu_vmem_capacity_bytes()
# Generation-aware working-set budget / scoped-VMEM limit (v7x has 64 MiB phys).
_BUDGET = 16 * 1024 * 1024 if _VMEM_CAP <= 64 * 1024 * 1024 else 32 * 1024 * 1024
_VMEM_LIMIT = 40 * 1024 * 1024 if _VMEM_CAP <= 64 * 1024 * 1024 else 80 * 1024 * 1024


# ---------------------------------------------------------------------------
# Host-side construction of the per-axis Laplacian operators
# ---------------------------------------------------------------------------
def _conv_matrix_1d(n):
    """V[i, p] = sum_a k[a] * [clip(i + a - 2, 0, n-1) == p]  (replicate-pad 5-tap)."""
    idx = np.arange(n)
    m = np.zeros((n, n), np.float32)
    for a, ka in enumerate(_K1D):
        src = np.clip(idx + a - 2, 0, n - 1)
        np.add.at(m, (idx, src), np.float32(ka))
    return m


def _axis_operators(H, W):
    """lap(d) = d - A @ d @ C  with  A = 2 V_H D_H V_H,  C = 2 V_W^T D_W V_W^T."""
    VH = _conv_matrix_1d(H)
    VW = _conv_matrix_1d(W)
    DH = np.diag((np.arange(H) % 2 == 0).astype(np.float32))
    DW = np.diag((np.arange(W) % 2 == 0).astype(np.float32))
    A = 2.0 * (VH @ DH @ VH)            # left (row) operator, H x H
    C = 2.0 * (VW.T @ DW @ VW.T)        # right (col) operator, W x W
    return jnp.asarray(A, jnp.float32), jnp.asarray(C, jnp.float32)


# ---------------------------------------------------------------------------
# Kernel
# ---------------------------------------------------------------------------
def _edge_loss_kernel(a_ref, c_ref, x_ref, y_ref, o_ref):
    bc = x_ref.shape[0]                 # small static int (<= 8)
    A = a_ref[...]                      # (H, H) f32
    C = c_ref[...]                      # (W, W) f32
    eps2 = jnp.float32(_EPS * _EPS)

    total = jnp.zeros((), jnp.float32)
    for b in range(bc):
        # Linearity: lap(x) - lap(y) == lap(x - y); single Laplacian on d.
        d = x_ref[b].astype(jnp.float32) - y_ref[b].astype(jnp.float32)   # (H, W)
        # lap(d) = d - A @ d @ C  — both matmuls on the MXU, no transposes.
        t = jnp.dot(d, C, preferred_element_type=jnp.float32,
                    precision=lax.Precision.HIGHEST)
        filt = jnp.dot(A, t, preferred_element_type=jnp.float32,
                       precision=lax.Precision.HIGHEST)
        lap = d - filt
        val = jnp.sqrt(lap * lap + eps2)
        # Two-stage sum (per-row, then across rows) keeps f32 accumulation tight.
        total = total + jnp.sum(jnp.sum(val, axis=-1, keepdims=True))

    # Small lane-dense partial block; wrapper reads element [0, 0].
    o_ref[...] = jnp.full(o_ref.shape, total, dtype=jnp.float32)


# ---------------------------------------------------------------------------
# Wrapper
# ---------------------------------------------------------------------------
def _pick_bc_tile(BC, H, W, itemsize):
    """Planes per grid step: fit VMEM budget, keep G = BC // bc >= 4 when possible
    (pipelining + megacore), cap the static per-plane unroll at 8."""
    fixed = 2 * 4 * (H * H + W * W)                 # A, C (worst-case double-buffered)
    per_plane = H * W * (4 * itemsize + 6 * 4)      # x,y double-buffered + f32 temps
    max_bc_vmem = max(1, (_BUDGET - fixed) // per_plane)
    max_bc_pipe = max(1, BC // 4)                   # keep >= ~4 grid steps
    cap = max(1, min(max_bc_vmem, max_bc_pipe, 8))
    bc = 1
    for d in range(1, BC + 1):
        if BC % d == 0 and d <= cap:
            bc = d
    return bc


@jax.jit
def edge_loss(x, y):
    """x, y: NCHW arrays (the module builds its kernel for C == 3). Scalar EdgeLoss."""
    N, Cch, H, W = x.shape
    BC = N * Cch
    xf = x.reshape(BC, H, W)
    yf = y.reshape(BC, H, W)

    A, Cm = _axis_operators(H, W)
    bc = _pick_bc_tile(BC, H, W, x.dtype.itemsize)
    G = BC // bc

    cost = pl.CostEstimate(
        flops=4 * BC * H * W * (H + W) + 8 * BC * H * W,   # two matmuls + elementwise
        transcendentals=BC * H * W,                         # sqrt per element
        bytes_accessed=(2 * BC * H * W * x.dtype.itemsize
                        + 4 * (H * H + W * W) + G * 128 * 4),
    )

    partial = pl.pallas_call(
        _edge_loss_kernel,
        out_shape=jax.ShapeDtypeStruct((G, 1, 128), jnp.float32),
        grid_spec=pltpu.PrefetchScalarGridSpec(
            num_scalar_prefetch=0,
            grid=(G,),
            in_specs=[
                pl.BlockSpec((H, H), lambda i: (0, 0)),          # A  (fetched once)
                pl.BlockSpec((W, W), lambda i: (0, 0)),          # C  (fetched once)
                pl.BlockSpec((bc, H, W), lambda i: (i, 0, 0)),   # x planes
                pl.BlockSpec((bc, H, W), lambda i: (i, 0, 0)),   # y planes
            ],
            out_specs=pl.BlockSpec((1, 1, 128), lambda i: (i, 0, 0)),
        ),
        compiler_params=pltpu.CompilerParams(
            dimension_semantics=("parallel",),
            vmem_limit_bytes=_VMEM_LIMIT,
        ),
        cost_estimate=cost,
    )(A, Cm, xf, yf)

    return partial[:, 0, 0].sum() / (BC * H * W)


# ---------------------------------------------------------------------------
# Pure-JAX reference (mirrors the PyTorch module) for a lightweight self-check
# ---------------------------------------------------------------------------
def _ref_edge_loss(x, y):
    k = jnp.asarray(_K1D, jnp.float32)
    k2 = jnp.outer(k, k)

    def conv_gauss(img):  # img: (BC, H, W)
        H, W = img.shape[1:]
        p = jnp.pad(img, ((0, 0), (2, 2), (2, 2)), mode="edge")
        out = jnp.zeros_like(img)
        for i in range(5):
            for j in range(5):
                out = out + k2[i, j] * p[:, i:i + H, j:j + W]
        return out

    def laplacian(img):
        H, W = img.shape[1:]
        filt = conv_gauss(img)
        mask = ((jnp.arange(H)[:, None] % 2) == 0) & ((jnp.arange(W)[None, :] % 2) == 0)
        nf = jnp.where(mask[None], filt * 4.0, 0.0)
        return img - conv_gauss(nf)

    N, Cch, H, W = x.shape
    lx = laplacian(x.reshape(N * Cch, H, W).astype(jnp.float32))
    ly = laplacian(y.reshape(N * Cch, H, W).astype(jnp.float32))
    d = lx - ly
    return jnp.mean(jnp.sqrt(d * d + _EPS * _EPS))


if __name__ == "__main__":
    key = jax.random.PRNGKey(0)
    kx, ky = jax.random.split(key)
    # The module's gaussian kernel is built for 3 channels (groups=3).
    x = jax.random.uniform(kx, (2, 3, 16, 16), dtype=jnp.float32)
    y = jax.random.uniform(ky, (2, 3, 16, 16), dtype=jnp.float32)

    loss = edge_loss(x, y)
    jax.block_until_ready(loss)

    ref = _ref_edge_loss(x, y)
    assert abs(float(loss) - float(ref)) <= 1e-5 + 2e-3 * abs(float(ref)), (
        float(loss), float(ref))
    print("KERNEL_OK")
</pallas_src>

<mosaic_0001>
module attributes {stable_mosaic.version = 11 : i64} {
  func.func @_edge_loss_kernel(%arg0: i32, %arg1: memref<16x16xf32, #tpu.memory_space<vmem>>, %arg2: memref<16x16xf32, #tpu.memory_space<vmem>>, %arg3: memref<1x16x16xf32, #tpu.memory_space<vmem>>, %arg4: memref<1x16x16xf32, #tpu.memory_space<vmem>>, %arg5: memref<1x1x128xf32, #tpu.memory_space<vmem>>) attributes {dimension_semantics = [#tpu.dimension_semantics<parallel>], iteration_bounds = array<i64: 6>, scalar_prefetch = 0 : i64, scratch_operands = 0 : i64, tpu.core_type = #tpu.core_type<tc>, window_params = [{pipeline_mode = #tpu.pipeline_mode<synchronous>, transform_indices = @transform_0, window_bounds = array<i64: 16, 16>}, {pipeline_mode = #tpu.pipeline_mode<synchronous>, transform_indices = @transform_1, window_bounds = array<i64: 16, 16>}, {transform_indices = @transform_2, window_bounds = array<i64: 1, 16, 16>}, {transform_indices = @transform_3, window_bounds = array<i64: 1, 16, 16>}, {transform_indices = @transform_4, window_bounds = array<i64: 1, 1, 128>}]} {
    %c0 = arith.constant 0 : index
    %c0_0 = arith.constant 0 : index
    %0 = vector.load %arg1[%c0, %c0_0] : memref<16x16xf32, #tpu.memory_space<vmem>>, vector<16x16xf32>
    %c0_1 = arith.constant 0 : index
    %c0_2 = arith.constant 0 : index
    %1 = vector.load %arg2[%c0_1, %c0_2] : memref<16x16xf32, #tpu.memory_space<vmem>>, vector<16x16xf32>
    %c0_3 = arith.constant 0 : index
    %c0_4 = arith.constant 0 : index
    %c0_5 = arith.constant 0 : index
    %2 = vector.load %arg3[%c0_3, %c0_4, %c0_5] : memref<1x16x16xf32, #tpu.memory_space<vmem>>, vector<1x16x16xf32>
    %3 = vector.shape_cast %2 : vector<1x16x16xf32> to vector<16x16xf32>
    %c0_6 = arith.constant 0 : index
    %c0_7 = arith.constant 0 : index
    %c0_8 = arith.constant 0 : index
    %4 = vector.load %arg4[%c0_6, %c0_7, %c0_8] : memref<1x16x16xf32, #tpu.memory_space<vmem>>, vector<1x16x16xf32>
    %5 = vector.shape_cast %4 : vector<1x16x16xf32> to vector<16x16xf32>
    %6 = arith.subf %3, %5 : vector<16x16xf32>
    %cst = arith.constant dense<0.000000e+00> : vector<16x16xf32>
    %7 = tpu.matmul %6, %1, %cst {dimension_numbers = #tpu.dot_dimension_numbers<[1], [0], [0], [1], [0, 0, 1, 1], [], []>, precision = #tpu.contract_precision<fp32>} : vector<16x16xf32>, vector<16x16xf32>, vector<16x16xf32> -> vector<16x16xf32>
    %cst_9 = arith.constant dense<0.000000e+00> : vector<16x16xf32>
    %8 = tpu.matmul %0, %7, %cst_9 {dimension_numbers = #tpu.dot_dimension_numbers<[1], [0], [0], [1], [0, 0, 1, 1], [], []>, precision = #tpu.contract_precision<fp32>} : vector<16x16xf32>, vector<16x16xf32>, vector<16x16xf32> -> vector<16x16xf32>
    %9 = arith.subf %6, %8 : vector<16x16xf32>
    %10 = arith.mulf %9, %9 : vector<16x16xf32>
    %cst_10 = arith.constant 9.99999997E-7 : f32
    %11 = vector.broadcast %cst_10 : f32 to vector<16x16xf32>
    %12 = arith.addf %10, %11 : vector<16x16xf32>
    %13 = math.sqrt %12 : vector<16x16xf32>
    %cst_11 = arith.constant dense<0.000000e+00> : vector<16xf32>
    %14 = vector.multi_reduction <add>, %13, %cst_11 [1] : vector<16x16xf32> to vector<16xf32>
    %15 = vector.shape_cast %14 : vector<16xf32> to vector<16x1xf32>
    %16 = vector.shape_cast %15 : vector<16x1xf32> to vector<1x16x1xf32>
    %cst_12 = arith.constant dense<0.000000e+00> : vector<1xf32>
    %17 = vector.multi_reduction <add>, %16, %cst_12 [1, 2] : vector<1x16x1xf32> to vector<1xf32>
    %18 = vector.shape_cast %17 : vector<1xf32> to vector<1x1x1xf32>
    %19 = vector.extract %18[0, 0, 0] : f32 from vector<1x1x1xf32>
    %cst_13 = arith.constant 0.000000e+00 : f32
    %20 = arith.addf %cst_13, %19 : f32
    %21 = vector.broadcast %20 : f32 to vector<1x1x128xf32>
    %c0_14 = arith.constant 0 : index
    %c0_15 = arith.constant 0 : index
    %c0_16 = arith.constant 0 : index
    %22 = vector.load %arg5[%c0_14, %c0_15, %c0_16] : memref<1x1x128xf32, #tpu.memory_space<vmem>>, vector<1x1x128xf32>
    tpu.vector_store %arg5[%c0_14, %c0_15, %c0_16], %21 {strides = array<i32>} : memref<1x1x128xf32, #tpu.memory_space<vmem>>, vector<1x1x128xf32>,
    return
  }
  func.func @transform_0(%arg0: i32) -> (i32, i32) {
    %c0_i32 = arith.constant 0 : i32
    %c0_i32_0 = arith.constant 0 : i32
    %c0_i32_1 = arith.constant 0 : i32
    return %c0_i32, %c0_i32_0 : i32, i32
  }
  func.func @transform_1(%arg0: i32) -> (i32, i32) {
    %c0_i32 = arith.constant 0 : i32
    %c0_i32_0 = arith.constant 0 : i32
    %c0_i32_1 = arith.constant 0 : i32
    return %c0_i32, %c0_i32_0 : i32, i32
  }
  func.func @transform_2(%arg0: i32) -> (i32, i32, i32) {
    %c0_i32 = arith.constant 0 : i32
    %c0_i32_0 = arith.constant 0 : i32
    %c0_i32_1 = arith.constant 0 : i32
    return %arg0, %c0_i32, %c0_i32_0 : i32, i32, i32
  }
  func.func @transform_3(%arg0: i32) -> (i32, i32, i32) {
    %c0_i32 = arith.constant 0 : i32
    %c0_i32_0 = arith.constant 0 : i32
    %c0_i32_1 = arith.constant 0 : i32
    return %arg0, %c0_i32, %c0_i32_0 : i32, i32, i32
  }
  func.func @transform_4(%arg0: i32) -> (i32, i32, i32) {
    %c0_i32 = arith.constant 0 : i32
    %c0_i32_0 = arith.constant 0 : i32
    %c0_i32_1 = arith.constant 0 : i32
    return %arg0, %c0_i32, %c0_i32_0 : i32, i32, i32
  }
}

</mosaic_0001>

<bundles_post_ra>
// kernel: edge_loss.1
= control target key start
LH: loop header
LB: loop body
LE: loop exit
PB: predicated region body
PF: predicated region fallthrough
CT: control target
= control target key end

     0   :  { %9 = vsyncpa [#allocation3], 0  ;;  %s2090_s0 = inlined_call_operand.hbm [shape: f32[16,16], index: 0, kind: input, shape index: {}]   ;;  %s2091_s1 = inlined_call_operand.hbm [shape: f32[16,16], index: 1, kind: input, shape index: {}]   ;;  %s2092_s2 = inlined_call_operand.hbm [shape: f32[6,16,16], index: 2, kind: input, shape index: {}]   ;;  %s2093_s3 = inlined_call_operand.hbm [shape: f32[6,16,16], index: 3, kind: input, shape index: {}]   ;;  %s2094_s4 = inlined_call_operand.vmem [shape: f32[6,1,128], index: 4, kind: output, shape index: {}]  }
   0x1   :  { %10 = vsyncpa [#allocation5], 0  ;;  %s1853_s15 = smov 0   ;;  %s1855_s16 = smov 0  }
   0x2   :  { %s1857_s17 = smov 0   ;;  %s1859_s18 = smov 0  }
   0x3 LB: > { %s1872_s19 = sadd.s32 4294967295, %s1820_s18   ;;  %s1875_s20 = sadd.s32 1, %s1820_s18   ;;  %s1820_s18 = sphi %s1859_s18, %s2114_s18   ;;  %s1816_s17 = sphi %s1857_s17, %s2113_s17   ;;  %s1812_s16 = sphi %s1855_s16, %s2112_s16   ;;  %s1808_s15 = sphi %s1853_s15, %s2111_s15  }
   0x4   : > { %s62_s21 = ssub.s32 %s1820_s18, %s1875_s20  ;;  %s65_s22 = sadd.s32 1, %s1816_s17 }
   0x5   : > { %p63_p0 = scmp.eq.s32.totalorder %s62_s21, 0  ;;  %p72_p1 = scmp.ne.s32.totalorder %s1816_s17, %s1812_s16 }
   0x6   : > { %p73_p2 = scmp.eq.s32.totalorder %s1820_s18, 0  ;;  %p78_p3 = scmp.ne.s32.totalorder %s1812_s16, %s1808_s15 }
   0x7   : > { %s1885_s23 = scalar_select %p63_p0, %s1816_s17, %s65_s22  }
   0x8   : > { %p1887_p4 = por %p73_p2, %p72_p1  ;;  %p2095_p5 = scmp.eq.s32.totalorder %s1872_s19, 0 }
   0x9   : > { %p1446_p6 = scmp.ge.s32.totalorder %s1820_s18, 1  ;;  %p141_p7 = scmp.lt.s32.totalorder %s1820_s18, 7 }
   0xa   : > { %p1896_p8 = por %p2095_p5, %p78_p3  ;;  %s1822_s27 = smov [#allocation2]  }
   0xb   : > { %p1900_p9 = pnand %p1446_p6, %p141_p7  ;;  %s153_s28 = sshll.u32 %s1822_s27, 4  ;;  %s154_s28 = int_to_ptr.vmem [resolvable:$true] %s153_s28 }
   0xc   : > { %s2100_s25 = scalar_select %p1896_p8, 1, 0 }
   0xd   : > { %s2101_s26 = scalar_select %p1900_p9, 1, 0 }
   0xe   : > { %p1611_p10 = pneg %p1900_p9  ;;  %p1627_p12 = scmp.lt.s32.totalorder %s1820_s18, 6 }
   0xf   : > { %s180_s30 = sand.u32 1, %s1820_s18   ;;  %s182_s5 = sand.u32 1, %s1816_s17  }
  0x10   : > { %p1908_p11 = pnand %p1611_p10, %p2095_p5  ;;  %p1917_p13 = pnand %p1627_p12, %p1887_p4 }
  0x11   : > { %s1681_s7 = scalar_lea.vmem %s154_s28, 256  ;;  %p1689_p6 = scmp.lt.s32.totalorder %s154_s28, %s154_s28 }
  0x12   : > { %p2096_p0 = pneg %p1908_p11  ;;  %p1682_p1 = scmp.ne.s32.totalorder %s154_s28, %s1681_s7 }
  0x13   : > { %p1690_p7 = scmp.lt.s32.totalorder %s1681_s7, %s1681_s7 }
  0x14   : > { %p1684_p2 = pnand %p1682_p1, %p2096_p0 }
  0x15   : > { %p1691_p10 = por %p1690_p7, %p1689_p6 }
  0x16   : > { %p1685_p3 = pneg %p1684_p2 }
  0x18   : > { %p1692_p5 = pnand %p1691_p10, %p1685_p3 }
  0x1a   : > { %1695 = shalt.err (!%p1692_p5)
}
  0x1b   : > { %s1823_s8 = smov 128   ;;  %s1824_s9 = smov 8  }
  0x1c   : > { %1614 = dma.hbm_to_vmem [thread:$0]  (!%p1908_p11), %s2090_s0, 256, %s154_s28, [#allocation3], %s1823_s8, %s1823_s8, %s1824_s9  }
  0x1d   : > { %s1934_s12 = sshll.u32 %s182_s5, 4  ;;  %s1463_s13 = sshll.u32 %s1820_s18, 8 }
  0x1e   : > { %s1942_s21 = scalar_lea.hbm %s2092_s2, %s1463_s13  ;;  %s184_s22 = scalar_lea.vmem [#allocation6], %s1934_s12 }
  0x1f   : > { %s191_s24 = sshll.u32 %s184_s22, 4  ;;  %s1825_s27 = smov [#allocation4]   ;;  %s1945_s24 = int_to_ptr.vmem [resolvable:$true] %s191_s24 }
  0x20   : > { %s1947_s7 = sshll.u32 %s1825_s27, 4  ;;  %s1949_s28 = scalar_lea.sflag [#allocation3], %s180_s30  ;;  %s167_s7 = int_to_ptr.vmem [resolvable:$true] %s1947_s7 }
  0x21   : > { %s1696_s5 = scalar_lea.hbm %s1942_s21, 256  ;;  %p1698_p5 = pneg %p1917_p13 }
  0x22   : > { %p1697_p4 = scmp.ne.s32.totalorder %s1942_s21, %s1696_s5  ;;  %s1701_s14 = scalar_lea.hbm %s2092_s2, 1536 }
  0x23   : > { %p1702_p2 = scmp.lt.s32.totalorder %s1942_s21, %s2092_s2  ;;  %p1703_p3 = scmp.lt.s32.totalorder %s1701_s14, %s1696_s5 }
  0x24   : > { %p1699_p12 = pnand %p1698_p5, %p1697_p4 }
  0x25   : > { %p1704_p6 = por %p1703_p3, %p1702_p2 }
  0x26   : > { %p1700_p1 = pneg %p1699_p12 }
  0x28   : > { %p1705_p7 = pnand %p1704_p6, %p1700_p1 }
  0x2a   : > { %1708 = shalt.err (!%p1705_p7)
}
  0x2b   : > { %s1709_s30 = scalar_lea.vmem %s1945_s24, 256  ;;  %s1826_s27 = smov [#allocation6]  }
  0x2c   : > { %p1710_p10 = scmp.ne.s32.totalorder %s1945_s24, %s1709_s30  ;;  %s1714_s10 = sshll.u32 %s1826_s27, 4  ;;  %s1715_s10 = int_to_ptr.vmem [resolvable:$false] %s1714_s10 }
  0x2d   : > { %s1716_s11 = scalar_lea.vmem %s1715_s10, 512  ;;  %p1717_p0 = scmp.lt.s32.totalorder %s1945_s24, %s1715_s10 }
  0x2e   : > { %p1712_p4 = pnand %p1710_p10, %p1698_p5  ;;  %p1718_p8 = scmp.lt.s32.totalorder %s1716_s11, %s1709_s30 }
  0x30   : > { %p1713_p12 = pneg %p1712_p4  ;;  %p1719_p9 = por %p1718_p8, %p1717_p0 }
  0x32   : > { %p1720_p2 = pnand %p1719_p9, %p1713_p12 }
  0x34   : > { %1723 = shalt.err (!%p1720_p2)
}
  0x35   : > { %1621 = dma.hbm_to_vmem [thread:$0]  (!%p1917_p13), %s1942_s21, 256, %s1945_s24, %s1949_s28, %s1823_s8, %s1823_s8, %s1824_s9  }
  0x36   : > { %s1735_s5 = scalar_lea.vmem %s167_s7, 256  ;;  %p2104_p3 = pneg %p1908_p11 }
  0x37   : > { %p1736_p1 = scmp.ne.s32.totalorder %s167_s7, %s1735_s5  ;;  %p1743_p9 = scmp.lt.s32.totalorder %s167_s7, %s167_s7 }
  0x38   : > { %p1744_p0 = scmp.lt.s32.totalorder %s1735_s5, %s1735_s5 }
  0x39   : > { %p1738_p6 = pnand %p1736_p1, %p2104_p3 }
  0x3a   : > { %p1745_p7 = por %p1744_p0, %p1743_p9 }
  0x3b   : > { %p1739_p8 = pneg %p1738_p6 }
  0x3d   : > { %p1746_p10 = pnand %p1745_p7, %p1739_p8 }
  0x3f   : > { %1749 = shalt.err (!%p1746_p10)
}
  0x40   : > { %1617 = dma.hbm_to_vmem [thread:$0]  (!%p1908_p11), %s2091_s1, 256, %s167_s7, [#allocation5], %s1823_s8, %s1823_s8, %s1824_s9  }
  0x41   : > { %s1996_s22 = scalar_lea.hbm %s2093_s3, %s1463_s13  ;;  %s205_s29 = scalar_lea.vmem [#allocation7], %s1934_s12 }
  0x42   : > { %s212_s30 = sshll.u32 %s205_s29, 4  ;;  %s1750_s27 = scalar_lea.hbm %s1996_s22, 256  ;;  %s213_s30 = int_to_ptr.vmem [resolvable:$true] %s212_s30 }
  0x43   : > { %p1751_p4 = scmp.ne.s32.totalorder %s1996_s22, %s1750_s27  ;;  %s1755_s18 = scalar_lea.hbm %s2093_s3, 1536 }
  0x44   : > { %p1756_p11 = scmp.lt.s32.totalorder %s1996_s22, %s2093_s3  ;;  %p1757_p1 = scmp.lt.s32.totalorder %s1755_s18, %s1750_s27 }
  0x45   : > { %p1753_p12 = pnand %p1751_p4, %p1698_p5 }
  0x46   : > { %p1758_p3 = por %p1757_p1, %p1756_p11 }
  0x47   : > { %p1754_p2 = pneg %p1753_p12 }
  0x49   : > { %p1759_p6 = pnand %p1758_p3, %p1754_p2 }
  0x4b   : > { %1762 = shalt.err (!%p1759_p6)
}
  0x4c   : > { %s1763_s12 = scalar_lea.vmem %s213_s30, 256  ;;  %s1827_s13 = smov [#allocation7]  }
  0x4d   : > { %p1764_p8 = scmp.ne.s32.totalorder %s213_s30, %s1763_s12  ;;  %s1768_s14 = sshll.u32 %s1827_s13, 4  ;;  %s1769_s14 = int_to_ptr.vmem [resolvable:$false] %s1768_s14 }
  0x4e   : > { %s1770_s15 = scalar_lea.vmem %s1769_s14, 512  ;;  %p1771_p7 = scmp.lt.s32.totalorder %s213_s30, %s1769_s14 }
  0x4f   : > { %p1766_p9 = pnand %p1764_p8, %p1698_p5  ;;  %p1772_p10 = scmp.lt.s32.totalorder %s1770_s15, %s1763_s12 }
  0x51   : > { %p1767_p0 = pneg %p1766_p9  ;;  %p1773_p4 = por %p1772_p10, %p1771_p7 }
  0x53   : > { %p1774_p12 = pnand %p1773_p4, %p1767_p0 }
  0x55   : > { %1777 = shalt.err (!%p1774_p12)
}
  0x56   : > { %1624 = dma.hbm_to_vmem [thread:$0]  (!%p1917_p13), %s1996_s22, 256, %s213_s30, %s1949_s28, %s1823_s8, %s1823_s8, %s1824_s9  }
  0x57   : > { %p2105_p5 = scmp.ne.s32.totalorder %s2101_s26, 0 }
  0x58   : > { %p2106_p2 = scmp.eq.s32.totalorder (!%p2105_p5), %s1872_s19, 0 }
  0x59   : > { %224 = sbr.rel (%p2105_p5) target bundleno = 919 (0x397), region = 36 }
  0x5e   : > { %1795 = dma.done.wait (%p2106_p2), [#allocation3], 256   ;;  %p2107_p11 = pmov %p2106_p2 }
  0x5f   : > { %p2108_p1 = pmov %p2106_p2 }
  0x60   : > { %1797 = vsyncadd (%p2107_p11), [#allocation3], 4294967040 }
  0x61   : > { %1799 = dma.done.wait (%p2108_p1), [#allocation5], 256   ;;  %p2109_p3 = pmov %p2108_p1 }
  0x62   : > { %s234_s6 = sand.u32 1, %s1872_s19   ;;  %s236_s8 = sand.u32 1, %s1812_s16  }
  0x63   : > { %1801 = vsyncadd (%p2109_p3), [#allocation5], 4294967040  ;;  %s1459_s9 = sshll.u32 %s236_s8, 4  ;;  %s235_s26 = scalar_lea.sflag [#allocation3], %s234_s6 }
  0x64   : > { %s238_s28 = scalar_lea.vmem [#allocation6], %s1459_s9  ;;  %p2110_p13 = scmp.ne.s32.totalorder %s2100_s25, 0 }
  0x66   : > { %1803 = dma.done.wait (%p2110_p13), %s235_s26, 512  }
  0x67   : > { %1805 = vsyncadd (%p2110_p13), %s235_s26, 4294966784  ;;  %v281_v0 = vld [vmem:[#allocation4 + $0x8] sm:$0xff]  ;;  %v280_v1 = vld [vmem:[#allocation4] sm:$0xff]  ;;  %s247_s21 = scalar_lea.vmem [#allocation7], %s1459_s9  ;;  %vm288_vm0 = vcmask 130048   ;;  %vm1331_vm5 = vcmask 7168  }
  0x68   : > { %v282_v2 = vld [vmem:[%s238_s28] sm:$0xff]  ;;  %v324_v3 = vand.u32 4294901760, %v281_v0  ;;  %v327_v4 = vand.u32 4294901760, %v280_v1  ;;  %v285_v6 = vld [vmem:[%s247_s21 + $0x8] sm:$0xff]  ;;  %p275_p6 = scmp.lt.s32.totalorder %s1872_s19, 5 }
  0x69   : > { %v284_v5 = vld [vmem:[%s247_s21] sm:$0xff]  ;;  %v283_v7 = vld [vmem:[%s238_s28 + $0x8] sm:$0xff] }
  0x6a   : > { %v2037_v8 = vsub.f32 %v282_v2, %v284_v5  ;;  %v2039_v9 = vsub.f32 %v283_v7, %v285_v6  ;;  %1513 = vmatprep.subr.mxu0 %v324_v3  ;;  %v412_v10 = vsub.f32 %v281_v0, %v324_v3  ;;  %v419_v11 = vsub.f32 %v280_v1, %v327_v4  ;;  %v278_v30 = vld [vmem:[#allocation2] sm:$0xff]  ;;  %v279_v37 = vld [vmem:[#allocation2 + $0x8] sm:$0xff]  ;;  %s2116_s19 = smov (!%p275_p6, %s1872_s19), 5 }
  0x6b   : > { %1514 = vmatpush3.msra.mxu0 %v324_v3  ;;  %v798_v31 = vsel %vm288_vm0, %v278_v30, 0  ;;  %v801_v39 = vsel %vm288_vm0, %v279_v37, 0  ;;  %s277_s22 = scalar_lea.vmem %s2094_s4, %s2116_s19 }
  0x6c   : > { %v290_v12 = vsel %vm288_vm0, %v2037_v8, 0  ;;  %v293_v13 = vsel %vm288_vm0, %v2039_v9, 0  ;;  %v413_v14 = vand.u32 4294901760, %v412_v10  ;;  %1515 = vmatprep.subr.mxu0 %v327_v4  ;;  %v420_v15 = vand.u32 4294901760, %v419_v11 }
  0x6d   : > { %v362_v16 = vand.u32 4294901760, %v290_v12  ;;  %v372_v17 = vand.u32 4294901760, %v293_v13  ;;  %1516 = vmatpush3.msra.mxu0 %v327_v4  ;;  %v2046_v32 = vand.u32 4294901760, %v798_v31  ;;  %v2057_v43 = vand.u32 4294901760, %v801_v39 }
  0x6e   : > { %v414_v18 = vsub.f32 %v412_v10, %v413_v14  ;;  %v421_v19 = vsub.f32 %v419_v11, %v420_v15  ;;  %1527 = vmatprep.subr.mxu0 %v412_v10 }
  0x6f   : > { %v363_v20 = vsub.f32 %v290_v12, %v362_v16  ;;  %1524 = vmatprep.mubr.f32.mxu1 %v362_v16  ;;  %v373_v21 = vsub.f32 %v293_v13, %v372_v17  ;;  %v2049_v33 = vsub.f32 %v798_v31, %v2046_v32  ;;  %v881_v49 = vsub.f32 %v801_v39, %v2057_v43 }
  0x70   : > { %v415_v22 = vand.u32 4294901760, %v414_v18  ;;  %v422_v23 = vand.u32 4294901760, %v421_v19 }
  0x71   : > { %v364_v24 = vand.u32 4294901760, %v363_v20  ;;  %v374_v25 = vand.u32 4294901760, %v373_v21  ;;  %v872_v34 = vand.u32 4294901760, %v2049_v33  ;;  %v882_v55 = vand.u32 4294901760, %v881_v49 }
  0x72   : > { %1520 = vmatprep.subr.mxu1 %v415_v22 }
  0x73   : > { %v365_v26 = vsub.f32 %v363_v20, %v364_v24  ;;  %v375_v27 = vsub.f32 %v373_v21, %v374_v25  ;;  %1521 = vmatpush3.msra.mxu1 %v415_v22  ;;  %v873_v35 = vsub.f32 %v2049_v33, %v872_v34  ;;  %v883_v62 = vsub.f32 %v881_v49, %v882_v55 }
  0x74   : > { %1522 = vmatprep.subr.mxu1 %v422_v23 }
  0x75   : > { %v366_v28 = vand.u32 4294901760, %v365_v26  ;;  %v376_v29 = vand.u32 4294901760, %v375_v27  ;;  %1523 = vmatpush3.msra.mxu1 %v422_v23  ;;  %v874_v36 = vand.u32 4294901760, %v873_v35 }
  0x76   : > { %1525 = vmatmul.mubr.f32.vlgmr.msra.gmra.mxu1 %v372_v17  ;;  %1534 = vmatprep.subr.mxu1 %v324_v3 }
  0x77   : > { %1517 = vmatprep.mubr.f32.mxu0 %v366_v28  ;;  %1535 = vmatpush3.msra.mxu1 %v324_v3 }
  0x78   : > { %1518 = vmatmul.mubr.f32.vlgmr.msra.gmra.mxu0 %v376_v29  ;;  %1536 = vmatprep.subr.mxu1 %v327_v4 }
  0x79   : > { %1528 = vmatpush3.msra.mxu0 %v412_v10  ;;  %1531 = vmatprep.mubr.f32.mxu0 %v363_v20 }
  0x7a   : > { %1529 = vmatprep.subr.mxu0 %v419_v11  ;;  %1537 = vmatpush3.msra.mxu1 %v327_v4 }
  0x7b   : > { %1530 = vmatpush3.msra.mxu0 %v419_v11  ;;  %1538 = vmatprep.mubr.f32.mxu1 %v364_v24 }
  0x7c   : > { %1532 = vmatmul.mubr.f32.vlgmr.msra.gmra.mxu0 %v373_v21  ;;  %1539 = vmatmul.mubr.f32.vlgmr.msra.gmra.mxu1 %v374_v25 }
  0x7d   : > { %1541 = vmatprep.subr.mxu0 %v413_v14  ;;  %1548 = vmatprep.subr.mxu1 %v324_v3 }
  0x7e   : > { %1542 = vmatpush3.msra.mxu0 %v413_v14  ;;  %1549 = vmatpush3.msra.mxu1 %v324_v3 }
  0x7f   : > { %1543 = vmatprep.subr.mxu0 %v420_v15  ;;  %1550 = vmatprep.subr.mxu1 %v327_v4 }
  0x80   : > { %1544 = vmatpush3.msra.mxu0 %v420_v15  ;;  %1545 = vmatprep.mubr.f32.mxu0 %v362_v16 }
  0x81   : > { %1551 = vmatpush3.msra.mxu1 %v327_v4  ;;  %1552 = vmatprep.mubr.f32.mxu1 %v362_v16  ;;  %v884_v4 = vand.u32 4294901760, %v883_v62 }
  0x82   : > { %1546 = vmatmul.mubr.f32.vlgmr.msra.gmra.mxu0 %v372_v17  ;;  %1553 = vmatmul.mubr.f32.vlgmr.msra.gmra.mxu1 %v372_v17 }
  0x83   : > { %1566 = vmatprep.mubr.f32.mxu1 %v2046_v32  ;;  %1559 = vmatprep.mubr.f32.mxu0 %v874_v36 }
 0x136   : > { %v1526_v38 = vpop.f32.mrf.mxu1 }
 0x138   : > { %v1519_v40 = vpop.f32.mrf.mxu0  ;;  %v459_v41 = vpop.f32.mrf.mxu1 }
 0x139   : > { %v466_v44 = vadd.f32 %v1526_v38, %v1519_v40 }
 0x13a   : > { %v368_v42 = vpop.f32.mrf.mxu0 }
 0x13b   : > { %v460_v47 = vadd.f32 %v459_v41, %v368_v42 }
 0x13c   : > { %v1533_v45 = vpop.f32.mrf.mxu0  ;;  %v1540_v46 = vpop.f32.mrf.mxu1 }
 0x13d   : > { %v549_v48 = vadd.f32 %v1533_v45, %v466_v44 }
 0x13e   : > { %v541_v50 = vpop.f32.mrf.mxu0  ;;  %v623_v51 = vpop.f32.mrf.mxu1 }
 0x13f   : > { %v632_v52 = vadd.f32 %v1540_v46, %v549_v48  ;;  %v542_v53 = vadd.f32 %v541_v50, %v460_v47 }
 0x141   : > { %v624_v54 = vadd.f32 %v623_v51, %v542_v53 }
 0x142   : > { %v1547_v56 = vpop.f32.mrf.mxu0  ;;  %v1554_v57 = vpop.f32.mrf.mxu1 }
 0x143   : > { %v715_v58 = vadd.f32 %v1547_v56, %v632_v52 }
 0x144   : > { %v708_v59 = vpop.f32.mrf.mxu0  ;;  %v787_v63 = vpop.f32.mrf.mxu1 }
 0x145   : > { %v794_v60 = vadd.f32 %v1554_v57, %v715_v58  ;;  %v709_v61 = vadd.f32 %v708_v59, %v624_v54 }
 0x147   : > { %v832_v0 = vand.u32 4294901760, %v794_v60  ;;  %v788_v1 = vadd.f32 %v787_v63, %v709_v61 }
 0x149   : > { %v920_v2 = vsub.f32 %v794_v60, %v832_v0  ;;  %v835_v3 = vand.u32 4294901760, %v788_v1  ;;  %1555 = vmatprep.subr.mxu0 %v832_v0 }
 0x14a   : > { %1556 = vmatpush3.msra.mxu0 %v832_v0 }
 0x14b   : > { %v927_v5 = vsub.f32 %v788_v1, %v835_v3  ;;  %1557 = vmatprep.subr.mxu0 %v835_v3  ;;  %v921_v6 = vand.u32 4294901760, %v920_v2 }
 0x14c   : > { %1558 = vmatpush3.msra.mxu0 %v835_v3 }
 0x14d   : > { %1569 = vmatprep.subr.mxu0 %v920_v2  ;;  %1560 = vmatmul.mubr.f32.vlgmr.msra.gmra.mxu0 %v884_v4  ;;  %v922_v7 = vsub.f32 %v920_v2, %v921_v6  ;;  %v928_v10 = vand.u32 4294901760, %v927_v5 }
 0x14e   : > { %1570 = vmatpush3.msra.mxu0 %v920_v2  ;;  %1573 = vmatprep.mubr.f32.mxu0 %v2049_v33 }
 0x14f   : > { %1571 = vmatprep.subr.mxu0 %v927_v5  ;;  %v923_v11 = vand.u32 4294901760, %v922_v7  ;;  %v929_v12 = vsub.f32 %v927_v5, %v928_v10 }
 0x150   : > { %1572 = vmatpush3.msra.mxu0 %v927_v5 }
 0x151   : > { %1562 = vmatprep.subr.mxu1 %v923_v11  ;;  %1583 = vmatprep.subr.mxu0 %v921_v6  ;;  %v930_v13 = vand.u32 4294901760, %v929_v12 }
 0x152   : > { %1563 = vmatpush3.msra.mxu1 %v923_v11  ;;  %1574 = vmatmul.mubr.f32.vlgmr.msra.gmra.mxu0 %v881_v49 }
 0x153   : > { %1584 = vmatpush3.msra.mxu0 %v921_v6  ;;  %1564 = vmatprep.subr.mxu1 %v930_v13 }
 0x154   : > { %1585 = vmatprep.subr.mxu0 %v928_v10  ;;  %1565 = vmatpush3.msra.mxu1 %v930_v13 }
 0x155   : > { %1586 = vmatpush3.msra.mxu0 %v928_v10  ;;  %1567 = vmatmul.mubr.f32.vlgmr.msra.gmra.mxu1 %v2057_v43 }
 0x156   : > { %1576 = vmatprep.subr.mxu1 %v832_v0  ;;  %1580 = vmatprep.mubr.f32.mxu1 %v872_v34 }
 0x157   : > { %1577 = vmatpush3.msra.mxu1 %v832_v0  ;;  %1587 = vmatprep.mubr.f32.mxu0 %v2046_v32 }
 0x158   : > { %1578 = vmatprep.subr.mxu1 %v835_v3  ;;  %1588 = vmatmul.mubr.f32.vlgmr.msra.gmra.mxu0 %v2057_v43 }
 0x159   : > { %1579 = vmatpush3.msra.mxu1 %v835_v3 }
 0x15a   : > { %1581 = vmatmul.mubr.f32.vlgmr.msra.gmra.mxu1 %v882_v55  ;;  %1590 = vmatprep.subr.mxu1 %v832_v0 }
 0x15b   : > { %1591 = vmatpush3.msra.mxu1 %v832_v0  ;;  %1594 = vmatprep.mubr.f32.mxu1 %v2046_v32 }
 0x15c   : > { %1592 = vmatprep.subr.mxu1 %v835_v3 }
 0x15d   : > { %1593 = vmatpush3.msra.mxu1 %v835_v3 }
 0x15e   : > { %1595 = vmatmul.mubr.f32.vlgmr.msra.gmra.mxu1 %v2057_v43 }
 0x20d   : > { %v1561_v14 = vpop.f32.mrf.mxu0 }
 0x20f   : > { %v876_v15 = vpop.f32.mrf.mxu0 }
 0x212   : > { %v1575_v16 = vpop.f32.mrf.mxu0 }
 0x214   : > { %v1049_v19 = vpop.f32.mrf.mxu0 }
 0x215   : > { %v1568_v17 = vpop.f32.mrf.mxu1 }
 0x216   : > { %v974_v18 = vadd.f32 %v1568_v17, %v1561_v14 }
 0x217   : > { %v967_v20 = vpop.f32.mrf.mxu1 }
 0x218   : > { %v1057_v21 = vadd.f32 %v1575_v16, %v974_v18  ;;  %v968_v22 = vadd.f32 %v967_v20, %v876_v15  ;;  %v1589_v25 = vpop.f32.mrf.mxu0 }
 0x21a   : > { %v1050_v23 = vadd.f32 %v1049_v19, %v968_v22  ;;  %v1582_v24 = vpop.f32.mrf.mxu1  ;;  %v1216_v30 = vpop.f32.mrf.mxu0 }
 0x21b   : > { %v1140_v26 = vadd.f32 %v1582_v24, %v1057_v21 }
 0x21c   : > { %v1131_v27 = vpop.f32.mrf.mxu1 }
 0x21d   : > { %v1223_v28 = vadd.f32 %v1589_v25, %v1140_v26  ;;  %v1132_v29 = vadd.f32 %v1131_v27, %v1050_v23 }
 0x21e   : > { %v1596_v31 = vpop.f32.mrf.mxu1 }
 0x21f   : > { %v1217_v32 = vadd.f32 %v1216_v30, %v1132_v29  ;;  %v1302_v33 = vadd.f32 %v1596_v31, %v1223_v28 }
 0x220   : > { %v1295_v34 = vpop.f32.mrf.mxu1 }
 0x221   : > { %v1306_v35 = vsub.f32 %v2039_v9, %v1302_v33  ;;  %v1296_v36 = vadd.f32 %v1295_v34, %v1217_v32 }
 0x223   : > { %v1308_v37 = vmul.f32 %v1306_v35, %v1306_v35  ;;  %v1305_v38 = vsub.f32 %v2037_v8, %v1296_v36 }
 0x225   : > { %v1310_v39 = vadd.f32 1e-06, %v1308_v37  ;;  %v1307_v40 = vmul.f32 %v1305_v38, %v1305_v38 }
 0x227   : > { %1666 = vrsqrt.f32 %v1310_v39  ;;  %v1309_v41 = vadd.f32 1e-06, %v1307_v40  ;;  %vm1320_vm2 = vcmp.eq.f32.partialorder %v1310_v39, inf  ;;  %v1323_v49 = vand.u32 2147483648, %v1310_v39 }
 0x228   : > { %vm1322_vm4 = vcmp.eq.f32.partialorder %v1310_v39, 0.0 }
 0x229   : > { %1668 = vrsqrt.f32 %v1309_v41  ;;  %vm1313_vm1 = vcmp.eq.f32.partialorder %v1309_v41, inf  ;;  %v1316_v46 = vand.u32 2147483648, %v1309_v41  ;;  %vm1315_vm3 = vcmp.eq.f32.partialorder %v1309_v41, 0.0 }
 0x234   : > { %v1667_v42 = vpop.eup %1666 }
 0x235   : > { %v1319_v43 = vmul.f32 %v1667_v42, %v1310_v39 }
 0x236   : > { %v1669_v44 = vpop.eup %1668 }
 0x237   : > { %v1312_v45 = vmul.f32 %v1669_v44, %v1309_v41  ;;  %v1321_v48 = vsel %vm1320_vm2, %v1310_v39, %v1319_v43 }
 0x238   : > { %v1324_v8 = vsel %vm1322_vm4, %v1323_v49, %v1321_v48 }
 0x239   : > { %v1314_v47 = vsel %vm1313_vm1, %v1309_v41, %v1312_v45  ;;  %v1328_v51 = vsel %vm288_vm0, %v1324_v8, 0.0 }
 0x23a   : > { %v1317_v9 = vsel %vm1315_vm3, %v1316_v46, %v1314_v47 }
 0x23b   : > { %v1325_v50 = vsel %vm288_vm0, %v1317_v9, 0.0 }
 0x23c   : > { %1326 = vadd.xlane.f32.xlu0 %v1325_v50 }
 0x240   : > { %1329 = vadd.xlane.f32.xlu0 %v1328_v51 }
 0x2c5   : > { %v1327_v52 = vpop.xlane.xlu0 %1326 }
 0x2c6   : > { %v1332_v54 = vsel %vm1331_vm5, %v1327_v52, 0.0 }
 0x2c9   : > { %v1330_v53 = vpop.xlane.xlu0 %1329 }
 0x2ca   : > { %v1333_v55 = vsel %vm1331_vm5, %v1330_v53, 0.0 }
 0x2cb   : > { %v1334_v56 = vadd.f32 %v1333_v55, %v1332_v54 }
 0x2cd   : > { %1335 = vadd.xlane.f32.xlu1 %v1334_v56 }
 0x356   : > { %v1336_v57 = vpop.xlane.xlu1 %1335 }
 0x357   : > { %v1337_v58 = vrot.slane %v1336_v57, 4 }
 0x359   : > { %v1338_v59 = vadd.f32 %v1337_v58, %v1336_v57 }
 0x35b   : > { %v1339_v60 = vrot.slane %v1338_v59, 2 }
 0x35d   : > { %v1340_v61 = vadd.f32 %v1339_v60, %v1338_v59 }
 0x35f   : > { %v1341_v62 = vrot.slane %v1340_v61, 1 }
 0x361   : > { %v1342_v63 = vadd.f32 %v1341_v62, %v1340_v61 }
 0x363   : > { %1597 = vpush %v1342_v63 }
 0x394   : > { %s1598_s29 = spop %1597 }
 0x395   : > { %v1345_v0 = vstv %s1598_s29 }
 0x396   : > { %1346 = vst [vmem:[%s277_s22] sm:$0x1] %v1345_v0 }
 0x397 PF: > { %p13_p8 = scmp.ge.s32.totalorder %s1875_s20, 8   ;;  %s2111_s15 = smov %s1812_s16 }
 0x398   : > { %s2112_s16 = smov %s1816_s17  ;;  %s2113_s17 = smov %s1885_s23 }
 0x399   : > { %s2114_s18 = smov %s1875_s20  ;;  %15 = sbr.rel (!%p13_p8) target bundleno = 3 (0x3), region = 94 }
 0x39e   :  { %1364 = vsyncpa [#allocation3], 1 }
 0x39f   :  { %1366 = vsyncpa [#allocation3 + $0x1], 1 }
 0x3a0   :  { %1367 = vsyncpa [#allocation5], 1 }

</bundles_post_ra>
